<compile_context>
chip_gen: v5e
topology: v5e:2x2
jax: 0.10.0
libtpu: 0.0.40
codegen_flags: <defaults>
</compile_context>

<pallas_src>
import functools

import jax
import jax.numpy as jnp
from jax.experimental import pallas as pl
from jax.experimental.pallas import tpu as pltpu

_LANE = 128
_SUBLANE = 8


def _round_up(x, m):
    return ((x + m - 1) // m) * m


def _vmem_capacity_bytes():
    """Physical VMEM of this TPU generation (fallback: 64 MiB = v7x per-core)."""
    try:
        return int(pltpu.get_tpu_info().vmem_capacity_bytes)
    except Exception:
        return 64 * 1024 * 1024


def _silu(y):
    # Exact sigmoid: exp (EUP) + exact reciprocal.  For very negative y,
    # exp(-y) -> inf and 1/inf -> 0, giving the correct SiLU limit (no NaN).
    return y * pl.reciprocal(1.0 + jnp.exp(-y))


# ---------------------------------------------------------------------------
# Path A (DENSE): small-channel layers.  The im2col patch is packed densely in
# the wrapper (K*K*Cin padded once to 128 lanes), so the kernel is one
# lane-dense MXU matmul per row tile + BN/SiLU epilogue.
# ---------------------------------------------------------------------------
def _dense_conv_kernel(cols_ref, w_ref, scale_ref, bias_ref, o_ref, *, apply_act):
    _, th, wo, kc = cols_ref.shape
    co = o_ref.shape[3]
    # Free reshape: wo % 8 == 0 (sublanes) and kc % 128 == 0 (lanes).
    patch = cols_ref[...].reshape(th * wo, kc)
    acc = jnp.dot(patch, w_ref[...], preferred_element_type=jnp.float32)
    y = acc * scale_ref[...] + bias_ref[...]            # folded BN (f32)
    if apply_act:
        y = _silu(y)
    o_ref[...] = y.reshape(1, th, wo, co).astype(o_ref.dtype)


# ---------------------------------------------------------------------------
# Path B (HALO): wide-channel layers.  Input stays in HBM; each grid step
# manually DMAs a (tile_h + K - 1)-row halo slab into a double-buffered VMEM
# scratch and prefetches the next slab while computing.  The contraction is
# done as K partial dots (one per kernel row kh, contraction K*Cin_p), which
# cuts the im2col concat vst/vld traffic ~3x vs a single K*K*Cin_p patch.
# ---------------------------------------------------------------------------
def _halo_conv_kernel(x_hbm, w_ref, scale_ref, bias_ref, o_ref, xbuf, sem, *,
                      K, tile_h, apply_act, compute_dtype):
    n = pl.program_id(0)
    h = pl.program_id(1)
    n_h = pl.num_programs(1)
    rows = tile_h + K - 1
    _, _, W_out_p, Cout_p = o_ref.shape
    Cin_p = xbuf.shape[3]
    M = tile_h * W_out_p
    slot = h % 2

    def slab_copy(hh, sl):
        return pltpu.make_async_copy(
            x_hbm.at[n, pl.ds(hh * tile_h, rows)], xbuf.at[sl], sem.at[sl])

    # First tile of each image: nothing was prefetched for us -> fetch now.
    @pl.when(h == 0)
    def _():
        slab_copy(h, slot).start()

    slab_copy(h, slot).wait()

    # Prefetch the next row slab of the same image while this tile computes.
    @pl.when(h + 1 < n_h)
    def _():
        slab_copy(h + 1, 1 - slot).start()

    acc = None
    for kh in range(K):                                   # static unroll
        taps = [
            xbuf[slot, pl.ds(kh, tile_h), pl.ds(kw, W_out_p), :].reshape(M, Cin_p)
            for kw in range(K)
        ]
        patch = jnp.concatenate(taps, axis=-1).astype(compute_dtype)   # (M, K*Cin_p)
        w_kh = w_ref[pl.ds(kh * K * Cin_p, K * Cin_p), :]
        part = jnp.dot(patch, w_kh, preferred_element_type=jnp.float32)
        acc = part if acc is None else acc + part

    y = acc * scale_ref[...] + bias_ref[...]              # folded BN (f32)
    if apply_act:
        y = _silu(y)
    o_ref[...] = y.reshape(1, tile_h, W_out_p, Cout_p).astype(o_ref.dtype)


def _pick_tile_h(H_out, W_out_p, footprint, budget_bytes, m_target=512):
    """Smallest tile_h whose M = tile_h*W_out_p reaches ~m_target MXU rows and
    whose per-step VMEM footprint fits the budget; else the largest that fits."""
    t_target = max(1, -(-m_target // W_out_p))
    best = 1
    for t in range(1, H_out + 1):
        if footprint(t) > budget_bytes:
            break                        # footprint is monotone in tile_h
        best = t
        if t >= t_target:
            break
    return best


def conv_bn_silu(x_nchw, weight_oihw, gamma, beta, running_mean, running_var, *,
                 stride=1, padding=1, eps=1e-3, activation=True, tile_h=None,
                 compute_dtype=jnp.bfloat16, out_dtype=None,
                 dense_patch_threshold=512):
    """PyTorch-equivalent forward of `Conv` (inference-mode BatchNorm).

    x_nchw:      (N, Cin, H, W)
    weight_oihw: (Cout, Cin, K, K)   -- groups=1 only
    returns:     (N, Cout, H_out, W_out)
    """
    assert stride == 1, "only stride=1 implemented"
    assert padding >= 0
    N, C_in, H, W = x_nchw.shape
    C_out, C_in_w, K, K2 = weight_oihw.shape
    assert C_in_w == C_in and K2 == K, "groups=1, square kernels only"

    out_dtype = x_nchw.dtype if out_dtype is None else out_dtype
    H_out = H + 2 * padding - K + 1
    W_out = W + 2 * padding - K + 1
    W_out_p = _round_up(W_out, _SUBLANE)      # sublane-aligned -> free reshapes
    Cout_p = _round_up(C_out, _LANE)          # lane-dense output stores
    # NOTE(v6e/v7x): for MXU-bound layers with Cout >= 256, padding Cout_p to a
    # multiple of 256 can improve 256x256-MXU utilization (not done by default
    # to avoid inflating HBM write-back for 128-channel layers).

    cbytes = jnp.dtype(compute_dtype).itemsize
    obytes = jnp.dtype(out_dtype).itemsize
    cap = _vmem_capacity_bytes()
    budget = int(cap * 0.4)                   # tile-sizing budget (leave headroom)

    # Folded inference BatchNorm: y = conv * scale + bias.
    scale = gamma / jnp.sqrt(running_var + eps)
    bias = beta - running_mean * scale
    scale2d = jnp.pad(scale, (0, Cout_p - C_out)).reshape(1, Cout_p).astype(jnp.float32)
    bias2d = jnp.pad(bias, (0, Cout_p - C_out)).reshape(1, Cout_p).astype(jnp.float32)

    x_nhwc = jnp.transpose(x_nchw, (0, 2, 3, 1)).astype(compute_dtype)
    w_hwio = jnp.transpose(weight_oihw, (2, 3, 1, 0))       # (K, K, Cin, Cout)

    use_dense = (K * K * C_in) <= dense_patch_threshold

    if use_dense:
        # -------- Path A: wrapper-side dense im2col (small Cin) --------
        KKC = K * K * C_in
        KKC_p = _round_up(KKC, _LANE)

        def footprint(t):
            M = t * W_out_p
            return (2 * M * KKC_p * cbytes            # input tile (double-buffered)
                    + 2 * KKC_p * Cout_p * cbytes     # weights (double-buffered)
                    + M * Cout_p * 4                  # f32 accumulator
                    + 2 * M * Cout_p * obytes         # output tile (double-buffered)
                    + 4 * Cout_p * 4)                 # scale / bias

        if tile_h is None:
            tile_h = _pick_tile_h(H_out, W_out_p, footprint, budget)
        tile_h = max(1, min(int(tile_h), H_out))
        n_h = -(-H_out // tile_h)                     # ceil: tail tile is padded
        H_out_p = n_h * tile_h
        vmem_limit = int(min(cap * 0.9,
                             max(32 << 20, 2.5 * footprint(tile_h) + (16 << 20))))

        x_pad = jnp.pad(x_nhwc, ((0, 0), (padding, padding),
                                 (padding, padding), (0, 0)))
        taps = [x_pad[:, kh:kh + H_out, kw:kw + W_out, :]
                for kh in range(K) for kw in range(K)]
        cols = jnp.concatenate(taps, axis=-1)         # (N, H_out, W_out, K*K*Cin)
        cols = jnp.pad(cols, ((0, 0), (0, H_out_p - H_out),
                              (0, W_out_p - W_out), (0, KKC_p - KKC)))
        w_mat = jnp.pad(w_hwio.reshape(KKC, C_out),
                        ((0, KKC_p - KKC), (0, Cout_p - C_out))).astype(compute_dtype)

        kernel = functools.partial(_dense_conv_kernel, apply_act=activation)
        out_nhwc = pl.pallas_call(
            kernel,
            out_shape=jax.ShapeDtypeStruct((N, H_out_p, W_out_p, Cout_p), out_dtype),
            grid_spec=pltpu.PrefetchScalarGridSpec(
                num_scalar_prefetch=0,
                grid=(N, n_h),
                in_specs=[
                    pl.BlockSpec((1, tile_h, W_out_p, KKC_p),
                                 lambda n, h: (n, h, 0, 0)),
                    pl.BlockSpec((KKC_p, Cout_p), lambda n, h: (0, 0)),
                    pl.BlockSpec((1, Cout_p), lambda n, h: (0, 0)),
                    pl.BlockSpec((1, Cout_p), lambda n, h: (0, 0)),
                ],
                out_specs=pl.BlockSpec((1, tile_h, W_out_p, Cout_p),
                                       lambda n, h: (n, h, 0, 0))),
            compiler_params=pltpu.CompilerParams(
                dimension_semantics=("parallel", "parallel"),
                vmem_limit_bytes=vmem_limit),
        )(cols, w_mat, scale2d, bias2d)

    else:
        # -------- Path B: halo-tiled manual-DMA path (wide Cin) --------
        Cin_p = _round_up(C_in, _LANE)
        Wp_p = _round_up(W_out_p + K - 1, _SUBLANE)

        def footprint(t):
            M = t * W_out_p
            return (2 * (t + K - 1) * Wp_p * Cin_p * cbytes   # halo double buffer
                    + 2 * K * K * Cin_p * Cout_p * cbytes     # weights
                    + 2 * M * K * Cin_p * cbytes              # per-kh patch (+slack)
                    + M * Cout_p * 4                          # f32 accumulator
                    + 2 * M * Cout_p * obytes                 # output tile
                    + 4 * Cout_p * 4)

        if tile_h is None:
            tile_h = _pick_tile_h(H_out, W_out_p, footprint, budget)
        tile_h = max(1, min(int(tile_h), H_out))
        n_h = -(-H_out // tile_h)
        H_out_p = n_h * tile_h
        Hp_p = H_out_p + K - 1
        rows = tile_h + K - 1
        vmem_limit = int(min(cap * 0.9,
                             max(32 << 20, 2.5 * footprint(tile_h) + (16 << 20))))

        # One fused pad: conv zero padding + tail rows/cols + channel lanes.
        x_pad = jnp.pad(
            x_nhwc,
            ((0, 0),
             (padding, Hp_p - H - padding),
             (padding, Wp_p - W - padding),
             (0, Cin_p - C_in)))
        w_mat = jnp.pad(w_hwio, ((0, 0), (0, 0),
                                 (0, Cin_p - C_in), (0, Cout_p - C_out)))
        w_mat = w_mat.reshape(K * K * Cin_p, Cout_p).astype(compute_dtype)

        kernel = functools.partial(_halo_conv_kernel, K=K, tile_h=tile_h,
                                   apply_act=activation, compute_dtype=compute_dtype)
        out_nhwc = pl.pallas_call(
            kernel,
            out_shape=jax.ShapeDtypeStruct((N, H_out_p, W_out_p, Cout_p), out_dtype),
            grid_spec=pltpu.PrefetchScalarGridSpec(
                num_scalar_prefetch=0,
                grid=(N, n_h),
                in_specs=[
                    pl.BlockSpec(memory_space=pl.ANY),          # input stays in HBM
                    pl.BlockSpec((K * K * Cin_p, Cout_p), lambda n, h: (0, 0)),
                    pl.BlockSpec((1, Cout_p), lambda n, h: (0, 0)),
                    pl.BlockSpec((1, Cout_p), lambda n, h: (0, 0)),
                ],
                out_specs=pl.BlockSpec((1, tile_h, W_out_p, Cout_p),
                                       lambda n, h: (n, h, 0, 0)),
                scratch_shapes=[
                    pltpu.VMEM((2, rows, Wp_p, Cin_p), compute_dtype),
                    pltpu.SemaphoreType.DMA((2,)),
                ]),
            compiler_params=pltpu.CompilerParams(
                # h must stay sequential for the cross-step halo prefetch.
                dimension_semantics=("parallel", "arbitrary"),
                vmem_limit_bytes=vmem_limit),
        )(x_pad, w_mat, scale2d, bias2d)

    out = out_nhwc[:, :H_out, :W_out, :C_out]        # strip all padding
    return jnp.transpose(out, (0, 3, 1, 2))          # NHWC -> NCHW


def _reference(x_nchw, weight_oihw, gamma, beta, running_mean, running_var,
               *, padding=1, eps=1e-3, activation=True):
    """Pure-JAX reference (lax conv + BN + SiLU) for correctness checking."""
    y = jax.lax.conv_general_dilated(
        x_nchw.astype(jnp.float32), weight_oihw.astype(jnp.float32),
        window_strides=(1, 1), padding=((padding, padding), (padding, padding)),
        dimension_numbers=("NCHW", "OIHW", "NCHW"))
    scale = (gamma / jnp.sqrt(running_var + eps)).reshape(1, -1, 1, 1)
    bias = (beta - running_mean * gamma / jnp.sqrt(running_var + eps)).reshape(1, -1, 1, 1)
    y = y * scale + bias
    if activation:
        y = y * jax.nn.sigmoid(y)
    return y


if __name__ == "__main__":
    key = jax.random.PRNGKey(0)
    keys = jax.random.split(key, 12)

    def make_params(kk, c_in, c_out, k):
        w = jax.random.normal(kk[0], (c_out, c_in, k, k), jnp.float32) * 0.1
        g = jax.random.normal(kk[1], (c_out,), jnp.float32) * 0.1 + 1.0
        b = jax.random.normal(kk[2], (c_out,), jnp.float32) * 0.1
        m = jax.random.normal(kk[3], (c_out,), jnp.float32) * 0.1
        v = jax.random.uniform(kk[4], (c_out,), jnp.float32, minval=0.5, maxval=1.5)
        return w, g, b, m, v

    N, H, W, K = 2, 16, 16, 3

    # ---- Config 1: small-channel layer (stem-like) -> dense im2col path.
    #      tile_h=5 does NOT divide H_out=16 -> exercises the padded-tail grid.
    C_in, C_out = 4, 8
    x = jax.random.normal(keys[0], (N, C_in, H, W), jnp.float32)
    w, g, b, m, v = make_params(keys[1:6], C_in, C_out, K)
    out = conv_bn_silu(x, w, g, b, m, v, stride=1, padding=1, eps=1e-3,
                       activation=True, tile_h=5)
    out = jax.block_until_ready(out)
    ref = _reference(x, w, g, b, m, v, padding=1, eps=1e-3, activation=True)
    assert out.shape == (N, C_out, H, W), out.shape
    # bf16 matmul operands -> relaxed tolerance vs f32 reference.
    assert jnp.allclose(out, ref, atol=3e-2, rtol=3e-2), \
        float(jnp.max(jnp.abs(out - ref)))

    # ---- Config 2: wide-channel layer -> halo / manual-DMA path.
    #      tile_h=3 does NOT divide H_out=16 -> exercises halo prefetch + tail.
    C_in2, C_out2 = 128, 128
    x2 = jax.random.normal(keys[6], (N, C_in2, H, W), jnp.float32)
    w2, g2, b2, m2, v2 = make_params(keys[7:12], C_in2, C_out2, K)
    out2 = conv_bn_silu(x2, w2, g2, b2, m2, v2, stride=1, padding=1, eps=1e-3,
                        activation=True, tile_h=3)
    out2 = jax.block_until_ready(out2)
    # Compare against a reference fed bf16-rounded operands (the kernel's
    # documented compute dtype) so the check isolates kernel math.
    x2r = x2.astype(jnp.bfloat16).astype(jnp.float32)
    w2r = w2.astype(jnp.bfloat16).astype(jnp.float32)
    ref2 = _reference(x2r, w2r, g2, b2, m2, v2, padding=1, eps=1e-3, activation=True)
    assert out2.shape == (N, C_out2, H, W), out2.shape
    assert jnp.allclose(out2, ref2, atol=2e-2, rtol=2e-2), \
        float(jnp.max(jnp.abs(out2 - ref2)))

    print("KERNEL_OK")
</pallas_src>

<mosaic_0001>
module attributes {stable_mosaic.version = 11 : i64} {
  func.func @_dense_conv_kernel(%arg0: i32, %arg1: i32, %arg2: memref<1x5x16x128xbf16, #tpu.memory_space<vmem>>, %arg3: memref<128x128xbf16, #tpu.memory_space<vmem>>, %arg4: memref<1x128xf32, #tpu.memory_space<vmem>>, %arg5: memref<1x128xf32, #tpu.memory_space<vmem>>, %arg6: memref<1x5x16x128xf32, #tpu.memory_space<vmem>>) attributes {dimension_semantics = [#tpu.dimension_semantics<parallel>, #tpu.dimension_semantics<parallel>], iteration_bounds = array<i64: 2, 4>, scalar_prefetch = 0 : i64, scratch_operands = 0 : i64, tpu.core_type = #tpu.core_type<tc>, window_params = [{transform_indices = @transform_0, window_bounds = array<i64: 1, 5, 16, 128>}, {pipeline_mode = #tpu.pipeline_mode<synchronous>, transform_indices = @transform_1, window_bounds = array<i64: 128, 128>}, {pipeline_mode = #tpu.pipeline_mode<synchronous>, transform_indices = @transform_2, window_bounds = array<i64: 1, 128>}, {pipeline_mode = #tpu.pipeline_mode<synchronous>, transform_indices = @transform_3, window_bounds = array<i64: 1, 128>}, {transform_indices = @transform_4, window_bounds = array<i64: 1, 5, 16, 128>}]} {
    %c0 = arith.constant 0 : index
    %c0_0 = arith.constant 0 : index
    %c0_1 = arith.constant 0 : index
    %c0_2 = arith.constant 0 : index
    %0 = vector.load %arg2[%c0, %c0_0, %c0_1, %c0_2] : memref<1x5x16x128xbf16, #tpu.memory_space<vmem>>, vector<1x5x16x128xbf16>
    %1 = vector.shape_cast %0 : vector<1x5x16x128xbf16> to vector<80x128xbf16>
    %c0_3 = arith.constant 0 : index
    %c0_4 = arith.constant 0 : index
    %2 = vector.load %arg3[%c0_3, %c0_4] : memref<128x128xbf16, #tpu.memory_space<vmem>>, vector<128x128xbf16>
    %cst = arith.constant dense<0.000000e+00> : vector<80x128xf32>
    %3 = tpu.matmul %1, %2, %cst {dimension_numbers = #tpu.dot_dimension_numbers<[1], [0], [0], [1], [0, 0, 1, 1], [], []>} : vector<80x128xbf16>, vector<128x128xbf16>, vector<80x128xf32> -> vector<80x128xf32>
    %c0_5 = arith.constant 0 : index
    %c0_6 = arith.constant 0 : index
    %4 = vector.load %arg4[%c0_5, %c0_6] : memref<1x128xf32, #tpu.memory_space<vmem>>, vector<1x128xf32>
    %5 = vector.broadcast %4 : vector<1x128xf32> to vector<80x128xf32>
    %6 = arith.mulf %3, %5 : vector<80x128xf32>
    %c0_7 = arith.constant 0 : index
    %c0_8 = arith.constant 0 : index
    %7 = vector.load %arg5[%c0_7, %c0_8] : memref<1x128xf32, #tpu.memory_space<vmem>>, vector<1x128xf32>
    %8 = vector.broadcast %7 : vector<1x128xf32> to vector<80x128xf32>
    %9 = arith.addf %6, %8 : vector<80x128xf32>
    %cst_9 = arith.constant 0.000000e+00 : f32
    %10 = vector.broadcast %cst_9 : f32 to vector<80x128xf32>
    %11 = arith.subf %10, %9 : vector<80x128xf32>
    %12 = math.exp %11 : vector<80x128xf32>
    %cst_10 = arith.constant 1.000000e+00 : f32
    %13 = vector.broadcast %cst_10 : f32 to vector<80x128xf32>
    %14 = arith.addf %13, %12 : vector<80x128xf32>
    %15 = tpu.reciprocal %14 : vector<80x128xf32> -> vector<80x128xf32>
    %16 = arith.mulf %9, %15 : vector<80x128xf32>
    %17 = vector.shape_cast %16 : vector<80x128xf32> to vector<1x5x16x128xf32>
    %c0_11 = arith.constant 0 : index
    %c0_12 = arith.constant 0 : index
    %c0_13 = arith.constant 0 : index
    %c0_14 = arith.constant 0 : index
    %18 = vector.load %arg6[%c0_11, %c0_12, %c0_13, %c0_14] : memref<1x5x16x128xf32, #tpu.memory_space<vmem>>, vector<1x5x16x128xf32>
    tpu.vector_store %arg6[%c0_11, %c0_12, %c0_13, %c0_14], %17 {strides = array<i32>} : memref<1x5x16x128xf32, #tpu.memory_space<vmem>>, vector<1x5x16x128xf32>,
    return
  }
  func.func @transform_0(%arg0: i32, %arg1: i32) -> (i32, i32, i32, i32) {
    %c0_i32 = arith.constant 0 : i32
    %c0_i32_0 = arith.constant 0 : i32
    %c0_i32_1 = arith.constant 0 : i32
    return %arg0, %arg1, %c0_i32, %c0_i32_0 : i32, i32, i32, i32
  }
  func.func @transform_1(%arg0: i32, %arg1: i32) -> (i32, i32) {
    %c0_i32 = arith.constant 0 : i32
    %c0_i32_0 = arith.constant 0 : i32
    %c0_i32_1 = arith.constant 0 : i32
    return %c0_i32, %c0_i32_0 : i32, i32
  }
  func.func @transform_2(%arg0: i32, %arg1: i32) -> (i32, i32) {
    %c0_i32 = arith.constant 0 : i32
    %c0_i32_0 = arith.constant 0 : i32
    %c0_i32_1 = arith.constant 0 : i32
    return %c0_i32, %c0_i32_0 : i32, i32
  }
  func.func @transform_3(%arg0: i32, %arg1: i32) -> (i32, i32) {
    %c0_i32 = arith.constant 0 : i32
    %c0_i32_0 = arith.constant 0 : i32
    %c0_i32_1 = arith.constant 0 : i32
    return %c0_i32, %c0_i32_0 : i32, i32
  }
  func.func @transform_4(%arg0: i32, %arg1: i32) -> (i32, i32, i32, i32) {
    %c0_i32 = arith.constant 0 : i32
    %c0_i32_0 = arith.constant 0 : i32
    %c0_i32_1 = arith.constant 0 : i32
    return %arg0, %arg1, %c0_i32, %c0_i32_0 : i32, i32, i32, i32
  }
}

</mosaic_0001>

<bundles_post_ra>
// kernel: tpu_custom_call.1
= control target key start
LH: loop header
LB: loop body
LE: loop exit
PB: predicated region body
PF: predicated region fallthrough
CT: control target
= control target key end

     0   :  { %s1552_s0 = inlined_call_operand.hbm [shape: bf16[2,20,16,128], index: 0, kind: input, shape index: {}]   ;;  %s1553_s1 = inlined_call_operand.hbm [shape: bf16[128,128], index: 1, kind: input, shape index: {}]   ;;  %s1554_s2 = inlined_call_operand.vmem [shape: f32[1,128], index: 2, kind: input, shape index: {}]   ;;  %s1555_s3 = inlined_call_operand.vmem [shape: f32[1,128], index: 3, kind: input, shape index: {}]   ;;  %s1556_s4 = inlined_call_operand.hbm [shape: f32[2,20,16,128], index: 4, kind: output, shape index: {}]  }
   0x1   :  { %1568 = sst [smem:[#allocation18_spill]] %s1553_s1 }
   0x2   :  { %9 = vsyncpa [#allocation3], 0 }
   0x3   :  { %11 = vsyncpa [#allocation3 + $0x1], 0 }
   0x4   :  { %12 = vsyncpa [#allocation6], 0 }
   0x5   :  { %13 = vsyncpa [#allocation4], 0 }
   0x6   :  { %15 = vsyncpa [#allocation4 + $0x1], 0  ;;  %s1179_s15 = smov 0   ;;  %s1181_s16 = smov 0  }
   0x7   :  { %s1183_s17 = smov 0   ;;  %s1185_s18 = smov 0  }
   0x8   :  { %s1187_s19 = smov 0   ;;  %s1189_s20 = smov 0  }
   0x9   :  { %s1191_s21 = smov 0   ;;  %s1193_s22 = smov 0  }
   0xa LB: > { %1569 = sst [smem:[#allocation11_spill]] %s1119_s15  ;;  %s741_s23 = sadd.s32 4294967295, %s1147_s22   ;;  %s1147_s22 = sphi %s1193_s22, %s21_s22   ;;  %s1143_s21 = sphi %s1191_s21, %s1616_s21   ;;  %s1139_s20 = sphi %s1189_s20, %s1610_s20   ;;  %s1135_s19 = sphi %s1187_s19, %s1615_s19   ;;  %s1131_s18 = sphi %s1185_s18, %s1609_s18   ;;  %s1127_s17 = sphi %s1183_s17, %s1614_s17   ;;  %s1123_s16 = sphi %s1181_s16, %s1613_s16   ;;  %s1119_s15 = sphi %s1179_s15, %s1612_s15  }
   0xb   : > { %1570 = sst [smem:[#allocation12_spill]] %s1139_s20  ;;  %s742_s24 = sadd.s32 4294967294, %s1147_s22  }
   0xc   : > { %1571 = sst [smem:[#allocation13_spill]] %s1147_s22  ;;  %p55_p0 = scmp.ne.s32.totalorder %s1123_s16, %s1119_s15 }
   0xd   : > { %p1223_p1 = scmp.eq.s32.totalorder %s741_s23, 0  ;;  %p1227_p2 = scmp.eq.s32.totalorder %s741_s23, 7 }
   0xe   : > { %p150_p3 = scmp.eq.s32.totalorder %s742_s24, 7  ;;  %p743_p5 = scmp.ge.s32.totalorder %s1147_s22, 1 }
   0xf   : > { %p1233_p4 = por %p1223_p1, %p55_p0  ;;  %p157_p7 = scmp.lt.s32.totalorder %s1147_s22, 9 }
  0x10   : > { %p1238_p6 = por %p150_p3, %p55_p0  ;;  %s1577_s1 = sld [smem:[#allocation18_spill]] }
  0x11   : > { %p1246_p8 = pnand %p743_p5, %p157_p7  ;;  %s1149_s7 = smov [#allocation5]  }
  0x12   : > { %s1575_s28 = scalar_select %p1238_p6, 1, 0 }
  0x13   : > { %p858_p9 = pneg %p1246_p8  ;;  %s170_s8 = sshll.u32 %s1149_s7, 4  ;;  %s171_s8 = int_to_ptr.vmem [resolvable:$true] %s170_s8 }
  0x14   : > { %1576 = sst [smem:[#allocation14_spill]] %s1575_s28  ;;  %s1557_s9 = smov 64  }
  0x15   : > { %p859_p10 = pnand %p858_p9, %p1223_p1  ;;  %s1558_s10 = smov 4  }
  0x16   : > { %s168_s5 = sshll.u32 %s1577_s1, 4  ;;  %s30_s11 = sadd.s32 1, %s1139_s20  ;;  %s169_s5 = int_to_ptr.hbm [resolvable:$true] %s168_s5 }
  0x17   : > { %861 = dma.hbm_to_vmem [thread:$0]  (!%p859_p10), %s169_s5, 1024, %s171_s8, [#allocation6], %s1557_s9, %s1557_s9, %s1558_s10  }
  0x18   : > { %p31_p11 = scmp.ge.s32.totalorder %s30_s11, 4  ;;  %s33_s12 = sadd.s32 1, %s1143_s21 }
  0x19   : > { %s42_s13 = sadd.s32 1, %s1127_s17  ;;  %p49_p12 = scmp.ne.s32.totalorder %s1127_s17, %s1123_s16 }
  0x1a   : > { %s1618_s11 = smov (%p31_p11, %s30_s11), 0  ;;  %s1620_s12 = smov (!%p31_p11, %s33_s12), %s1143_s21 }
  0x1b   : > { %1579 = sst [smem:[#allocation15_spill]] %s1618_s11  ;;  %s38_s14 = ssub.s32 %s1139_s20, %s1618_s11 }
  0x1c   : > { %p50_p13 = scmp.eq.s32.totalorder %s1147_s22, 0  ;;  %p35_p0 = scmp.ge.s32.totalorder %s1620_s12, 2 }
  0x1d   : > { %p1270_p3 = por %p1227_p2, %p49_p12  ;;  %p871_p7 = scmp.lt.s32.totalorder %s1147_s22, 8 }
  0x1e   : > { %p51_p5 = por %p50_p13, %p49_p12  ;;  %s1622_s12 = smov (%p35_p0, %s1620_s12), 0 }
  0x1f   : > { %s1580_s23 = scalar_select %p1270_p3, 1, 0 }
  0x20   : > { %1582 = sst [smem:[#allocation17_spill]] %s1622_s12  ;;  %s190_s24 = sand.u32 1, %s1127_s17  }
  0x21   : > { %1581 = sst [smem:[#allocation16_spill]] %s1580_s23  ;;  %s806_s29 = smul.u32 10, %s1139_s20 }
  0x22   : > { %s37_s30 = ssub.s32 %s1143_s21, %s1622_s12  ;;  %s845_s7 = smul.u32 40, %s190_s24 }
  0x23   : > { %s39_s5 = sor.u32 %s38_s14, %s37_s30  ;;  %s846_s8 = smul.u32 40, %s1143_s21 }
  0x24   : > { %p40_p9 = scmp.eq.s32.totalorder %s39_s5, 0  ;;  %p863_p10 = pnand %p871_p7, %p51_p5 }
  0x25   : > { %s200_s26 = sadd.s32 %s846_s8, %s806_s29  ;;  %s194_s10 = scalar_lea.vmem [#allocation2], %s845_s7 }
  0x26   : > { %s1283_s9 = scalar_select %p40_p9, %s1127_s17, %s42_s13  }
  0x27   : > { %s205_s1 = sshll.u32 %s194_s10, 4  ;;  %s747_s11 = sshll.u32 %s200_s26, 2  ;;  %s206_s1 = int_to_ptr.vmem [resolvable:$true] %s205_s1 }
  0x28   : > { %s202_s22 = scalar_lea.hbm %s1552_s0, %s747_s11  ;;  %s191_s20 = scalar_lea.sflag [#allocation3], %s190_s24 }
  0x29   : > { %s203_s23 = sshll.u32 %s202_s22, 4  ;;  %s1583_s12 = smov 4   ;;  %s204_s23 = int_to_ptr.hbm [resolvable:$true] %s203_s23 }
  0x2a   : > { %s1584_s14 = smov 64   ;;  %217 = sbr.rel (%p1246_p8) target bundleno = 293 (0x125), region = 36 }
  0x2b   : > { %865 = dma.hbm_to_vmem [thread:$0]  (!%p863_p10), %s204_s23, 640, %s206_s1, %s191_s20, %s1584_s14, %s1584_s14, %s1583_s12  }
  0x2c   : > { %s1294_s13 = sand.u32 (!%p1246_p8), 1, %s1123_s16  }
  0x2d   : > { %s847_s10 = smul.u32 (!%p1246_p8), 40, %s1294_s13  ;;  %s220_s29 = scalar_lea.sflag (!%p1246_p8), [#allocation3], %s1294_s13 }
  0x2f   : > { %s1298_s15 = scalar_lea.vmem [#allocation2], %s847_s10 }
  0x30   : > { %1106 = dma.done.wait (%p1233_p4), %s220_s29, 640  }
  0x31   : > { %1108 = vsyncadd (%p1233_p4), %s220_s29, 4294966656 }
  0x32   : > { %1110 = dma.done.wait (%p1223_p1), [#allocation6], 1024  }
  0x33   : > { %1112 = vsyncadd (%p1223_p1), [#allocation6], 4294966272  ;;  %v819_v0 = vld [vmem:[#allocation5 + $0x38] sm:$0xff]  ;;  %v818_v1 = vld [vmem:[#allocation5 + $0x30] sm:$0xff]  ;;  %s848_s27 = smul.u32 80, %s1294_s13  ;;  %s623_s8 = scalar_lea.sflag [#allocation4], %s1294_s13 }
  0x34   : > { %360 = vmatpush.bf16.msra.mxu0 %v819_v0  ;;  %821 = vmatpush.bf16.msra.mxu1 %v819_v0  ;;  %v817_v2 = vld [vmem:[#allocation5 + $0x28] sm:$0xff]  ;;  %v816_v3 = vld [vmem:[#allocation5 + $0x20] sm:$0xff]  ;;  %v815_v4 = vld [vmem:[#allocation5 + $0x18] sm:$0xff]  ;;  %s820_s6 = smul.u32 10, %s1131_s18 }
  0x35   : > { %822 = vmatpush.bf16.msra.mxu2 %v819_v0  ;;  %823 = vmatpush.bf16.msra.mxu3 %v819_v0  ;;  %v814_v5 = vld [vmem:[#allocation5 + $0x10] sm:$0xff]  ;;  %v813_v6 = vld [vmem:[#allocation5 + $0x8] sm:$0xff]  ;;  %v812_v7 = vld [vmem:[#allocation5] sm:$0xff]  ;;  %s1425_s28 = scalar_lea.vmem [#allocation7], %s848_s27  ;;  %s849_s11 = smul.u32 40, %s1135_s19 }
  0x36   : > { %v807_v8 = vld [vmem:[%s1298_s15] sm:$0xff]  ;;  %v808_v9 = vld [vmem:[%s1298_s15 + $0x8] sm:$0xff]  ;;  %v809_v10 = vld [vmem:[%s1298_s15 + $0x10] sm:$0xff]  ;;  %s638_s30 = sshll.u32 %s1425_s28, 4  ;;  %s639_s30 = int_to_ptr.vmem [resolvable:$true] %s638_s30 }
  0x37   : > { %v810_v11 = vld [vmem:[%s1298_s15 + $0x18] sm:$0xff]  ;;  %v811_v12 = vld [vmem:[%s1298_s15 + $0x20] sm:$0xff]  ;;  %s635_s12 = sadd.s32 %s849_s11, %s820_s6  ;;  %s1065_s15 = scalar_lea.hbm %s1556_s4, 640 }
  0x38   : > { %361 = vmatpush.bf16.msra.mxu0 %v818_v1  ;;  %824 = vmatpush.bf16.msra.mxu1 %v818_v1  ;;  %v1316_v13 = vld [vmem:[%s1554_s2] ss:$0 sm:$0xff]  ;;  %s803_s23 = sshll.u32 %s635_s12, 3 }
  0x39   : > { %825 = vmatpush.bf16.msra.mxu2 %v818_v1  ;;  %826 = vmatpush.bf16.msra.mxu3 %v818_v1  ;;  %v1321_v14 = vld [vmem:[%s1555_s3] ss:$0 sm:$0xff]  ;;  %s637_s24 = scalar_lea.hbm %s1556_s4, %s803_s23 }
  0x3a   : > { %s640_s7 = sshll.u32 %s637_s24, 4  ;;  %s641_s7 = int_to_ptr.hbm [resolvable:$true] %s640_s7 }
  0x3b   : > { %s1059_s26 = sshra.s32 %s641_s7, 4  ;;  %s1060_s26 = int_to_ptr.hbm [resolvable:$true] %s1059_s26 }
  0x3c   : > { %362 = vmatpush.bf16.msra.mxu0 %v817_v2  ;;  %827 = vmatpush.bf16.msra.mxu1 %v817_v2  ;;  %s1061_s14 = scalar_lea.hbm %s1060_s26, 80  ;;  %p1066_p8 = scmp.lt.s32.totalorder %s1060_s26, %s1556_s4 }
  0x3d   : > { %828 = vmatpush.bf16.msra.mxu2 %v817_v2  ;;  %829 = vmatpush.bf16.msra.mxu3 %v817_v2  ;;  %p1062_p1 = scmp.ne.s32.totalorder %s1060_s26, %s1061_s14  ;;  %p1067_p11 = scmp.lt.s32.totalorder %s1065_s15, %s1061_s14 }
  0x3f   : > { %p1063_p2 = pnand %p1062_p1, %p1270_p3  ;;  %p1068_p12 = por %p1067_p11, %p1066_p8 }
  0x40   : > { %363 = vmatpush.bf16.msra.mxu0 %v816_v3  ;;  %830 = vmatpush.bf16.msra.mxu1 %v816_v3 }
  0x41   : > { %831 = vmatpush.bf16.msra.mxu2 %v816_v3  ;;  %832 = vmatpush.bf16.msra.mxu3 %v816_v3  ;;  %p1064_p4 = pneg %p1063_p2 }
  0x43   : > { %p1069_p13 = pnand %p1068_p12, %p1064_p4 }
  0x44   : > { %364 = vmatpush.bf16.msra.mxu0 %v815_v4  ;;  %833 = vmatpush.bf16.msra.mxu1 %v815_v4 }
  0x45   : > { %834 = vmatpush.bf16.msra.mxu2 %v815_v4  ;;  %835 = vmatpush.bf16.msra.mxu3 %v815_v4 }
  0x48   : > { %365 = vmatpush.bf16.msra.mxu0 %v814_v5  ;;  %836 = vmatpush.bf16.msra.mxu1 %v814_v5 }
  0x49   : > { %837 = vmatpush.bf16.msra.mxu2 %v814_v5  ;;  %838 = vmatpush.bf16.msra.mxu3 %v814_v5 }
  0x4c   : > { %366 = vmatpush.bf16.msra.mxu0 %v813_v6  ;;  %839 = vmatpush.bf16.msra.mxu1 %v813_v6 }
  0x4d   : > { %840 = vmatpush.bf16.msra.mxu2 %v813_v6  ;;  %841 = vmatpush.bf16.msra.mxu3 %v813_v6 }
  0x50   : > { %367 = vmatpush.bf16.msra.mxu0 %v812_v7  ;;  %842 = vmatpush.bf16.msra.mxu1 %v812_v7 }
  0x51   : > { %843 = vmatpush.bf16.msra.mxu2 %v812_v7  ;;  %844 = vmatpush.bf16.msra.mxu3 %v812_v7 }
  0x53   : > { %368 = vmatmul.bf16.vlgmr.msra.gmra.mxu0 %v807_v8  ;;  %373 = vmatmul.bf16.vlgmr.msra.gmra.mxu1 %v808_v9 }
  0x54   : > { %378 = vmatmul.bf16.vlgmr.msra.gmra.mxu2 %v809_v10  ;;  %383 = vmatmul.bf16.vlgmr.msra.gmra.mxu3 %v810_v11 }
  0x64   : > { %388 = vmatmul.bf16.gmra.mxu3 %v811_v12 }
  0xd0   : > { %v369_v15 = vpop.f32.mrf.mxu0  ;;  %v374_v16 = vpop.f32.mrf.mxu1 }
  0xd1   : > { %v398_v17 = vmul.f32 %v1316_v13, %v369_v15  ;;  %v400_v18 = vmul.f32 %v1316_v13, %v374_v16 }
  0xd3   : > { %v1326_v19 = vadd.f32 %v1321_v14, %v398_v17  ;;  %v1329_v20 = vadd.f32 %v1321_v14, %v400_v18 }
  0xd5   : > { %v422_v21 = vsub.f32 0.0, %v1326_v19  ;;  %v424_v22 = vsub.f32 0.0, %v1329_v20 }
  0xd7   : > { %v432_v23 = vmul.f32 1.442695, %v422_v21  ;;  %v436_v24 = vmul.f32 1.442695, %v424_v22  ;;  %v379_v25 = vpop.f32.mrf.mxu2  ;;  %v384_v26 = vpop.f32.mrf.mxu3 }
  0xd8   : > { %v402_v27 = vmul.f32 %v1316_v13, %v379_v25  ;;  %v404_v28 = vmul.f32 %v1316_v13, %v384_v26  ;;  %v371_v29 = vpop.f32.mrf.mxu0  ;;  %v376_v30 = vpop.f32.mrf.mxu1 }
  0xd9   : > { %945 = vpow2.f32 %v432_v23  ;;  %v399_v31 = vmul.f32 %v1316_v13, %v371_v29  ;;  %v401_v32 = vmul.f32 %v1316_v13, %v376_v30 }
  0xda   : > { %947 = vpow2.f32 %v436_v24  ;;  %v1338_v33 = vadd.f32 %v1321_v14, %v402_v27  ;;  %v1341_v34 = vadd.f32 %v1321_v14, %v404_v28 }
  0xdb   : > { %v1344_v35 = vadd.f32 %v1321_v14, %v399_v31  ;;  %v1347_v36 = vadd.f32 %v1321_v14, %v401_v32 }
  0xdc   : > { %v426_v37 = vsub.f32 0.0, %v1338_v33  ;;  %v428_v38 = vsub.f32 0.0, %v1341_v34 }
  0xdd   : > { %v423_v39 = vsub.f32 0.0, %v1344_v35  ;;  %v425_v40 = vsub.f32 0.0, %v1347_v36 }
  0xde   : > { %v440_v41 = vmul.f32 1.442695, %v426_v37  ;;  %v444_v42 = vmul.f32 1.442695, %v428_v38 }
  0xdf   : > { %v946_v43 = vpop.eup %945  ;;  %v381_v44 = vpop.f32.mrf.mxu2  ;;  %v434_v47 = vmul.f32 1.442695, %v423_v39  ;;  %v438_v50 = vmul.f32 1.442695, %v425_v40 }
  0xe0   : > { %v948_v45 = vpop.eup %947  ;;  %v452_v46 = vadd.f32 1.0, %v946_v43  ;;  %949 = vpow2.f32 %v440_v41  ;;  %v403_v48 = vmul.f32 %v1316_v13, %v381_v44  ;;  %v386_v51 = vpop.f32.mrf.mxu3 }
  0xe1   : > { %v454_v49 = vadd.f32 1.0, %v948_v45  ;;  %951 = vpow2.f32 %v444_v42  ;;  %v405_v54 = vmul.f32 %v1316_v13, %v386_v51 }
  0xe2   : > { %953 = vrcp.f32 %v452_v46  ;;  %v1355_v52 = vadd.f32 %v1321_v14, %v403_v48  ;;  %v471_v53 = vand.u32 2147483647, %v452_v46  ;;  %v473_v56 = vand.u32 2147483648, %v452_v46 }
  0xe3   : > { %955 = vrcp.f32 %v454_v49  ;;  %v499_v57 = vand.u32 2147483647, %v454_v49  ;;  %v501_v60 = vand.u32 2147483648, %v454_v49  ;;  %vm467_vm0 = vweird.f32 %v452_v46 }
  0xe4   : > { %957 = vpow2.f32 %v434_v47  ;;  %v427_v58 = vsub.f32 0.0, %v1355_v52  ;;  %vm495_vm1 = vweird.f32 %v454_v49  ;;  %vm1363_vm2 = vcmp.eq.f32.partialorder %v471_v53, 8.507059e+37 }
  0xe5   : > { %959 = vpow2.f32 %v438_v50  ;;  %v1369_v3 = vadd.f32 %v1321_v14, %v405_v54  ;;  %v474_v5 = vor.u32 1.1754944e-38, %v473_v56  ;;  %vm1371_vm3 = vcmp.eq.f32.partialorder %v499_v57, 8.507059e+37 }
  0xe6   : > { %v950_v55 = vpop.eup %949  ;;  %v442_v8 = vmul.f32 1.442695, %v427_v58  ;;  %v502_v11 = vor.u32 1.1754944e-38, %v501_v60 }
  0xe7   : > { %v952_v59 = vpop.eup %951  ;;  %v1359_v61 = vadd.f32 1.0, %v950_v55  ;;  %v429_v23 = vsub.f32 0.0, %v1369_v3 }
  0xe8   : > { %v954_v62 = vpop.eup %953  ;;  %v1361_v63 = vadd.f32 1.0, %v952_v59  ;;  %v389_v12 = vpop.f32.mrf.mxu3 }
  0xe9   : > { %v956_v0 = vpop.eup %955  ;;  %v463_v1 = vmul.f32 %v954_v62, %v452_v46  ;;  %961 = vrcp.f32 %v1359_v61  ;;  %vm468_vm4 = vweird.f32 %v954_v62  ;;  %v527_v16 = vand.u32 2147483647, %v1359_v61 }
  0xea   : > { %v958_v4 = vpop.eup %957  ;;  %v491_v6 = vmul.f32 %v956_v0, %v454_v49  ;;  %963 = vrcp.f32 %v1361_v63  ;;  %vm496_vm5 = vweird.f32 %v956_v0  ;;  %v529_v17 = vand.u32 2147483648, %v1359_v61  ;;  %vm1385_vm6 = vmor %vm467_vm0, %vm468_vm4 }
  0xeb   : > { %v960_v9 = vpop.eup %959  ;;  %v464_v10 = vsub.f32 1.0, %v463_v1  ;;  %v1378_v21 = vadd.f32 1.0, %v958_v4  ;;  %vm523_vm7 = vweird.f32 %v1359_v61  ;;  %965 = vpow2.f32 %v442_v8  ;;  %vm1393_vm8 = vmor %vm495_vm1, %vm496_vm5 }
  0xec   : > { %v492_v15 = vsub.f32 1.0, %v491_v6  ;;  %v1380_v22 = vadd.f32 1.0, %v960_v9  ;;  %v406_v26 = vmul.f32 %v1316_v13, %v389_v12  ;;  %v555_v30 = vand.u32 2147483647, %v1361_v63 }
  0xed   : > { %v465_v18 = vmul.f32 %v954_v62, %v464_v10  ;;  %v557_v31 = vand.u32 2147483648, %v1361_v63  ;;  %967 = vrcp.f32 %v1378_v21  ;;  %vm1401_vm9 = vcmp.eq.f32.partialorder %v527_v16, 8.507059e+37 }
  0xee   : > { %v493_v25 = vmul.f32 %v956_v0, %v492_v15  ;;  %v530_v39 = vor.u32 1.1754944e-38, %v529_v17  ;;  %vm551_vm10 = vweird.f32 %v1361_v63  ;;  %969 = vrcp.f32 %v1380_v22 }
  0xef   : > { %v962_v27 = vpop.eup %961  ;;  %v466_v28 = vadd.f32 %v954_v62, %v465_v18  ;;  %v446_v42 = vmul.f32 1.442695, %v429_v23  ;;  %vm1417_vm12 = vcmp.eq.f32.partialorder %v555_v30, 8.507059e+37  ;;  %v558_v50 = vor.u32 1.1754944e-38, %v557_v31 }
  0xf0   : > { %v494_v32 = vadd.f32 %v956_v0, %v493_v25  ;;  %v519_v37 = vmul.f32 %v962_v27, %v1359_v61  ;;  %v964_v40 = vpop.eup %963  ;;  %vm524_vm11 = vweird.f32 %v962_v27  ;;  %vm481_vm13 = vweird.f32 %v1378_v21  ;;  %v391_v15 = vpop.f32.mrf.mxu3 }
  0xf1   : > { %v470_v41 = vsel %vm1385_vm6, %v954_v62, %v466_v28  ;;  %v547_v46 = vmul.f32 %v964_v40, %v1361_v63  ;;  %v966_v51 = vpop.eup %965  ;;  %vm1431_vm14 = vmor %vm523_vm7, %vm524_vm11  ;;  %v487_v57 = vand.u32 2147483648, %v1378_v21  ;;  %971 = vpow2.f32 %v446_v42 }
  0xf2   : > { %v475_v43 = vsel %vm1363_vm2, %v474_v5, %v470_v41  ;;  %v498_v44 = vsel %vm1393_vm8, %v956_v0, %v494_v32  ;;  %v520_v45 = vsub.f32 1.0, %v519_v37  ;;  %v1437_v58 = vadd.f32 1.0, %v966_v51 }
  0xf3   : > { %v602_v47 = vmul.f32 %v475_v43, %v1326_v19  ;;  %v503_v48 = vsel %vm1371_vm3, %v502_v11, %v498_v44  ;;  %v548_v55 = vsub.f32 1.0, %v547_v46  ;;  %v968_v56 = vpop.eup %967  ;;  %vm552_vm15 = vweird.f32 %v964_v40 }
  0xf4   : > { %v604_v53 = vmul.f32 %v503_v48, %v1329_v20  ;;  %v521_v54 = vmul.f32 %v962_v27, %v520_v45  ;;  %v485_v20 = vand.u32 2147483647, %v1378_v21  ;;  %v477_v62 = vmul.f32 %v968_v56, %v1378_v21  ;;  %v970_v0 = vpop.eup %969  ;;  %vm553_vm2 = vmor %vm551_vm10, %vm552_vm15 }
  0xf5   : > { %612 = vst [vmem:[%s1425_s28] sm:$0xff] %v602_v47  ;;  %v549_v60 = vmul.f32 %v964_v40, %v548_v55  ;;  %vm482_vm0 = vweird.f32 %v968_v56  ;;  %vm509_vm1 = vweird.f32 %v1380_v22  ;;  %973 = vrcp.f32 %v1437_v58 }
  0xf6   : > { %614 = vst [vmem:[%s1425_s28 + $0x10] sm:$0xff] %v604_v53  ;;  %v522_v59 = vadd.f32 %v962_v27, %v521_v54  ;;  %v1444_v61 = vadd.f32 %v1321_v14, %v406_v26  ;;  %v478_v4 = vsub.f32 1.0, %v477_v62  ;;  %v505_v5 = vmul.f32 %v970_v0, %v1380_v22  ;;  %vm1461_vm4 = vmor %vm481_vm13, %vm482_vm0 }
  0xf7   : > { %v550_v2 = vadd.f32 %v964_v40, %v549_v60  ;;  %vm510_vm3 = vweird.f32 %v970_v0  ;;  %v513_v7 = vand.u32 2147483647, %v1380_v22  ;;  %v515_v8 = vand.u32 2147483648, %v1380_v22  ;;  %v972_v16 = vpop.eup %971 }
  0xf8   : > { %v526_v1 = vsel %vm1431_vm14, %v962_v27, %v522_v59  ;;  %v479_v11 = vmul.f32 %v968_v56, %v478_v4  ;;  %v506_v12 = vsub.f32 1.0, %v505_v5  ;;  %vm1465_vm5 = vcmp.eq.f32.partialorder %v485_v20, 8.507059e+37  ;;  %vm1475_vm6 = vmor %vm509_vm1, %vm510_vm3 }
  0xf9   : > { %v531_v6 = vsel %vm1401_vm9, %v530_v39, %v526_v1  ;;  %v554_v10 = vsel %vm553_vm2, %v964_v40, %v550_v2  ;;  %v430_v23 = vsub.f32 0.0, %v1444_v61  ;;  %v459_v27 = vadd.f32 1.0, %v972_v16 }
  0xfa   : > { %v606_v9 = vmul.f32 %v531_v6, %v1338_v33  ;;  %v559_v17 = vsel %vm1417_vm12, %v558_v50, %v554_v10  ;;  %v488_v33 = vor.u32 1.1754944e-38, %v487_v57  ;;  %v480_v25 = vadd.f32 %v968_v56, %v479_v11 }
  0xfb   : > { %v608_v24 = vmul.f32 %v559_v17, %v1341_v34  ;;  %v507_v26 = vmul.f32 %v970_v0, %v506_v12  ;;  %v974_v28 = vpop.eup %973  ;;  %v516_v29 = vor.u32 1.1754944e-38, %v515_v8  ;;  %v448_v30 = vmul.f32 1.442695, %v430_v23 }
  0xfc   : > { %616 = vst [vmem:[%s1425_s28 + $0x20] sm:$0xff] %v606_v9  ;;  %v407_v31 = vmul.f32 %v1316_v13, %v391_v15  ;;  %v484_v34 = vsel %vm1461_vm4, %v968_v56, %v480_v25  ;;  %vm514_vm7 = vcmp.eq.f32.partialorder %v513_v7, 8.507059e+37  ;;  %v533_v37 = vmul.f32 %v974_v28, %v1437_v58 }
  0xfd   : > { %618 = vst [vmem:[%s1425_s28 + $0x30] sm:$0xff] %v608_v24  ;;  %v508_v32 = vadd.f32 %v970_v0, %v507_v26  ;;  %v489_v22 = vsel %vm1465_vm5, %v488_v33, %v484_v34  ;;  %975 = vrcp.f32 %v459_v27  ;;  %vm537_vm8 = vweird.f32 %v1437_v58 }
  0xfe   : > { %v603_v38 = vmul.f32 %v489_v22, %v1344_v35  ;;  %v534_v13 = vsub.f32 1.0, %v533_v37  ;;  %v543_v41 = vand.u32 2147483648, %v1437_v58  ;;  %977 = vpow2.f32 %v448_v30 }
  0xff   : > { %v512_v39 = vsel %vm1475_vm6, %v970_v0, %v508_v32  ;;  %v1492_v42 = vadd.f32 %v1321_v14, %v407_v31  ;;  %vm538_vm9 = vweird.f32 %v974_v28  ;;  %v541_v35 = vand.u32 2147483647, %v1437_v58 }
 0x100   : > { %v517_v40 = vsel %vm514_vm7, %v516_v29, %v512_v39  ;;  %613 = vst [vmem:[%s1425_s28 + $0x8] sm:$0xff] %v603_v38  ;;  %v535_v44 = vmul.f32 %v974_v28, %v534_v13  ;;  %vm539_vm10 = vmor %vm537_vm8, %vm538_vm9  ;;  %v544_v48 = vor.u32 1.1754944e-38, %v543_v41  ;;  %v571_v56 = vand.u32 2147483648, %v459_v27 }
 0x101   : > { %v605_v43 = vmul.f32 %v517_v40, %v1347_v36  ;;  %v431_v45 = vsub.f32 0.0, %v1492_v42  ;;  %vm542_vm11 = vcmp.eq.f32.partialorder %v541_v35, 8.507059e+37  ;;  %v569_v20 = vand.u32 2147483647, %v459_v27 }
 0x102   : > { %v536_v46 = vadd.f32 %v974_v28, %v535_v44  ;;  %vm565_vm13 = vweird.f32 %v459_v27  ;;  %v572_v59 = vor.u32 1.1754944e-38, %v571_v56 }
 0x103   : > { %615 = vst [vmem:[%s1425_s28 + $0x18] sm:$0xff] %v605_v43  ;;  %v976_v47 = vpop.eup %975  ;;  %v450_v49 = vmul.f32 1.442695, %v431_v45  ;;  %vm570_vm15 = vcmp.eq.f32.partialorder %v569_v20, 8.507059e+37 }
 0x104   : > { %v540_v50 = vsel %vm539_vm10, %v974_v28, %v536_v46  ;;  %v561_v14 = vmul.f32 %v976_v47, %v459_v27  ;;  %v978_v51 = vpop.eup %977  ;;  %vm566_vm12 = vweird.f32 %v976_v47 }
 0x105   : > { %v545_v53 = vsel %vm542_vm11, %v544_v48, %v540_v50  ;;  %979 = vpow2.f32 %v450_v49  ;;  %v460_v55 = vadd.f32 1.0, %v978_v51  ;;  %vm567_vm14 = vmor %vm565_vm13, %vm566_vm12 }
 0x106   : > { %v607_v36 = vmul.f32 %v545_v53, %v1355_v52  ;;  %v562_v54 = vsub.f32 1.0, %v561_v14 }
 0x107   : > { %981 = vrcp.f32 %v460_v55  ;;  %v585_v5 = vand.u32 2147483648, %v460_v55  ;;  %v583_v7 = vand.u32 2147483647, %v460_v55  ;;  %vm579_vm1 = vweird.f32 %v460_v55 }
 0x108   : > { %617 = vst [vmem:[%s1425_s28 + $0x28] sm:$0xff] %v607_v36  ;;  %v563_v19 = vmul.f32 %v976_v47, %v562_v54 }
 0x109   : > { %v586_v11 = vor.u32 1.1754944e-38, %v585_v5  ;;  %vm584_vm3 = vcmp.eq.f32.partialorder %v583_v7, 8.507059e+37 }
 0x10a   : > { %v564_v57 = vadd.f32 %v976_v47, %v563_v19 }
 0x10b   : > { %v980_v58 = vpop.eup %979 }
 0x10c   : > { %v568_v60 = vsel %vm567_vm14, %v976_v47, %v564_v57  ;;  %v461_v62 = vadd.f32 1.0, %v980_v58 }
 0x10d   : > { %v573_v52 = vsel %vm570_vm15, %v572_v59, %v568_v60  ;;  %v982_v0 = vpop.eup %981 }
 0x10e   : > { %v609_v1 = vmul.f32 %v573_v52, %v1369_v3  ;;  %983 = vrcp.f32 %v461_v62  ;;  %v575_v2 = vmul.f32 %v982_v0, %v460_v55  ;;  %vm580_vm0 = vweird.f32 %v982_v0 }
 0x10f   : > { %vm581_vm2 = vmor %vm579_vm1, %vm580_vm0  ;;  %v599_v16 = vand.u32 2147483648, %v461_v62  ;;  %v597_v18 = vand.u32 2147483647, %v461_v62  ;;  %vm593_vm5 = vweird.f32 %v461_v62 }
 0x110   : > { %619 = vst [vmem:[%s1425_s28 + $0x38] sm:$0xff] %v609_v1  ;;  %v576_v4 = vsub.f32 1.0, %v575_v2 }
 0x111   : > { %v600_v23 = vor.u32 1.1754944e-38, %v599_v16  ;;  %vm598_vm7 = vcmp.eq.f32.partialorder %v597_v18, 8.507059e+37 }
 0x112   : > { %v577_v6 = vmul.f32 %v982_v0, %v576_v4 }
 0x114   : > { %v984_v8 = vpop.eup %983  ;;  %v578_v9 = vadd.f32 %v982_v0, %v577_v6 }
 0x115   : > { %v589_v10 = vmul.f32 %v984_v8, %v461_v62  ;;  %vm594_vm4 = vweird.f32 %v984_v8 }
 0x116   : > { %v582_v3 = vsel %vm581_vm2, %v982_v0, %v578_v9  ;;  %vm595_vm6 = vmor %vm593_vm5, %vm594_vm4 }
 0x117   : > { %v590_v12 = vsub.f32 1.0, %v589_v10  ;;  %v587_v15 = vsel %vm584_vm3, %v586_v11, %v582_v3 }
 0x118   : > { %v610_v17 = vmul.f32 %v587_v15, %v1444_v61 }
 0x119   : > { %v591_v63 = vmul.f32 %v984_v8, %v590_v12 }
 0x11a   : > { %620 = vst [vmem:[%s1425_s28 + $0x40] sm:$0xff] %v610_v17 }
 0x11b   : > { %v592_v33 = vadd.f32 %v984_v8, %v591_v63 }
 0x11d   : > { %v596_v24 = vsel %vm595_vm6, %v984_v8, %v592_v33 }
 0x11e   : > { %v601_v61 = vsel %vm598_vm7, %v600_v23, %v596_v24 }
 0x11f   : > { %v611_v25 = vmul.f32 %v601_v61, %v1492_v42 }
 0x121   : > { %621 = vst [vmem:[%s1425_s28 + $0x48] sm:$0xff] %v611_v25 }
 0x122   : > { %1072 = shalt.err (!%p1069_p13)
}
 0x123   : > { %s1152_s13 = smov 128   ;;  %s1153_s22 = smov 8  }
 0x124   : > { %856 = dma.vmem_to_hbm [thread:$0]  (%p1270_p3), %s639_s30, 1280, %s641_s7, %s623_s8, %s1152_s13, %s1152_s13, %s1153_s22  }
 0x125 PF: > { %s1606_s25 = sld [smem:[#allocation13_spill]] }
 0x126   : > { %s1607_s27 = sld [smem:[#allocation11_spill]] }
 0x12b   : > { %p873_p0 = scmp.ge.s32.totalorder %s1606_s25, 2 }
 0x12c   : > { %s655_s6 = sand.u32 1, %s1607_s27  }
 0x12d   : > { %p867_p5 = pnand %p873_p0, %p1238_p6  ;;  %s656_s11 = scalar_lea.sflag [#allocation4], %s655_s6 }
 0x12f   : > { %p868_p7 = pneg %p867_p5 }
 0x131   : > { %1114 = dma.done.wait (%p868_p7), %s656_s11, 1280  }
 0x132   : > { %1116 = vsyncadd (%p868_p7), %s656_s11, 4294966016  ;;  %s21_s22 = sadd.s32 1, %s1606_s25   ;;  %s1609_s18 = sld [smem:[#allocation12_spill]] }
 0x133   : > { %p18_p9 = scmp.ge.s32.totalorder %s21_s22, 10   ;;  %s1610_s20 = sld [smem:[#allocation15_spill]] }
 0x134   : > { %s1611_s12 = sld [smem:[#allocation17_spill]]  ;;  %s1612_s15 = smov %s1123_s16 }
 0x135   : > { %s1613_s16 = smov %s1127_s17  ;;  %s1614_s17 = smov %s1283_s9 }
 0x136   : > { %s1615_s19 = smov %s1143_s21  ;;  %20 = sbr.rel (!%p18_p9) target bundleno = 10 (0xa), region = 85 }
 0x13a   : > { %s1616_s21 = smov %s1611_s12 }
 0x13b   :  { %662 = vsyncpa [#allocation3], 1 }
 0x13c   :  { %664 = vsyncpa [#allocation3 + $0x1], 1 }
 0x13d   :  { %665 = vsyncpa [#allocation6], 1 }
 0x13e   :  { %666 = vsyncpa [#allocation4], 1 }
 0x13f   :  { %668 = vsyncpa [#allocation4 + $0x1], 1 }

</bundles_post_ra>
